<compile_context>
chip_gen: v6e
topology: v6e:2x2x1
jax: 0.10.0
libtpu: 0.0.40
codegen_flags: <defaults>
</compile_context>

<pallas_src>
import jax
import jax.numpy as jnp
from jax.experimental import pallas as pl
from jax.experimental.pallas import tpu as pltpu


def _round_up(x, m):
    return ((x + m - 1) // m) * m


# ----------------------------------------------------------------------------- kernel
def encoder_kernel(x_ref, w1_ref, b1_ref, wmv_ref, bmv_ref, noise_ref, out_ref):
    # Layer 1: Linear with eval-mode BatchNorm1d pre-folded into (w1, b1) on the
    # host, then ReLU.  Dropout is identity in eval mode.
    h = jnp.dot(x_ref[...], w1_ref[...], preferred_element_type=jnp.float32)
    h = jnp.maximum(h + b1_ref[...], 0.0)

    # Fused mean/var heads: a single MXU pass over concat(Wm, Wv) (padded to a
    # multiple of 128 columns per head so the slices below are lane-aligned).
    mv = jnp.dot(h, wmv_ref[...], preferred_element_type=jnp.float32) + bmv_ref[...]
    no_p = mv.shape[1] // 2
    q_m = mv[:, :no_p]
    v_c = jnp.clip(mv[:, no_p:], -5.0, 5.0)
    q_v = jnp.exp(v_c)
    std = jnp.exp(0.5 * v_c)               # sqrt(q_v) without a separate sqrt pass
    latent = q_m + std * noise_ref[...]

    # Single lane-dense packed store: [ q_m | q_v | latent ], each piece 128-aligned.
    out_ref[...] = jnp.concatenate([q_m, q_v, latent], axis=-1)


# ----------------------------------------------------------------------------- wrapper
def encoder_forward(x, params, noise, *, tb=None):
    B, n_in = x.shape
    n_hidden = params["w1"].shape[1]
    n_out = params["wm"].shape[1]

    # ---- host-side preprocessing (f32) -------------------------------------
    # Fold eval-mode BatchNorm1d(eps=1e-3) into the first linear layer.
    scale = params["gamma"] * jax.lax.rsqrt(params["rvar"] + 1e-3)        # (1, H)
    w1f = params["w1"] * scale                                            # (n_in, H)
    b1f = (params["b1"] - params["rmean"]) * scale + params["beta"]       # (1, H)

    # Concatenate mean/var heads, padding each head to a lane-aligned width.
    no_p = _round_up(n_out, 128)
    pad_c = ((0, 0), (0, no_p - n_out))
    wmv = jnp.concatenate([jnp.pad(params["wm"], pad_c),
                           jnp.pad(params["wv"], pad_c)], axis=1)         # (H, 2*no_p)
    bmv = jnp.concatenate([jnp.pad(params["bm"], pad_c),
                           jnp.pad(params["bv"], pad_c)], axis=1)         # (1, 2*no_p)

    # Batch tiling (pad B up to a multiple of the tile).
    if tb is None:
        tb = min(512, _round_up(B, 8))
    b_p = _round_up(B, tb)
    x_p = jnp.pad(x, ((0, b_p - B), (0, 0)))
    noise_p = jnp.pad(noise, ((0, b_p - B), (0, no_p - n_out)))

    grid = (b_p // tb,)
    out_w = 3 * no_p

    # Conservative VMEM budget: double-buffered batch tiles + resident weights.
    tile_bytes = 4 * tb * (n_in + no_p + out_w)
    resident_bytes = 4 * (n_in * n_hidden + n_hidden * 2 * no_p + n_hidden + 2 * no_p)
    vmem_limit = int(1.5 * (2 * tile_bytes + resident_bytes)) + (4 << 20)
    vmem_limit = max(32 << 20, min(vmem_limit, 64 << 20))   # legal on v5e/v6e/v7x

    cost = pl.CostEstimate(
        flops=2 * b_p * (n_in * n_hidden + n_hidden * 2 * no_p),
        transcendentals=2 * b_p * no_p,
        bytes_accessed=4 * (b_p * (n_in + no_p + out_w)
                            + n_in * n_hidden + n_hidden * 2 * no_p
                            + n_hidden + 2 * no_p),
    )

    packed = pl.pallas_call(
        encoder_kernel,
        out_shape=jax.ShapeDtypeStruct((b_p, out_w), jnp.float32),
        grid=grid,
        in_specs=[
            pl.BlockSpec((tb, n_in), lambda i: (i, 0)),          # x tile
            pl.BlockSpec((n_in, n_hidden), lambda i: (0, 0)),    # W1 (BN-folded), resident
            pl.BlockSpec((1, n_hidden), lambda i: (0, 0)),       # b1 (BN-folded), resident
            pl.BlockSpec((n_hidden, 2 * no_p), lambda i: (0, 0)),  # [Wm|Wv], resident
            pl.BlockSpec((1, 2 * no_p), lambda i: (0, 0)),       # [bm|bv], resident
            pl.BlockSpec((tb, no_p), lambda i: (i, 0)),          # noise tile
        ],
        out_specs=pl.BlockSpec((tb, out_w), lambda i: (i, 0)),   # packed [qm|qv|lat]
        compiler_params=pltpu.CompilerParams(
            dimension_semantics=("parallel",),
            vmem_limit_bytes=vmem_limit,
        ),
        cost_estimate=cost,
    )(x_p, w1f, b1f, wmv, bmv, noise_p)

    q_m = packed[:B, 0:n_out]
    q_v = packed[:B, no_p:no_p + n_out]
    latent = packed[:B, 2 * no_p:2 * no_p + n_out]
    return q_m, q_v, latent


# ----------------------------------------------------------------------------- params / reference
def init_params(key, n_input, n_hidden, n_output):
    ks = jax.random.split(key, 6)

    def lin_init(kw, kb, fan_in, fan_out):
        bound = 1.0 / jnp.sqrt(jnp.float32(fan_in))
        w = jax.random.uniform(kw, (fan_in, fan_out), jnp.float32, -bound, bound)
        b = jax.random.uniform(kb, (1, fan_out), jnp.float32, -bound, bound)
        return w, b

    w1, b1 = lin_init(ks[0], ks[1], n_input, n_hidden)
    wm, bm = lin_init(ks[2], ks[3], n_hidden, n_output)
    wv, bv = lin_init(ks[4], ks[5], n_hidden, n_output)

    return {
        "w1": w1, "b1": b1,
        "gamma": jnp.ones((1, n_hidden), jnp.float32),
        "beta": jnp.zeros((1, n_hidden), jnp.float32),
        "rmean": jnp.zeros((1, n_hidden), jnp.float32),
        "rvar": jnp.ones((1, n_hidden), jnp.float32),
        "wm": wm, "bm": bm,
        "wv": wv, "bv": bv,
    }


def reference_forward(x, p, noise):
    h = x @ p["w1"] + p["b1"]
    h = (h - p["rmean"]) * jax.lax.rsqrt(p["rvar"] + 1e-3) * p["gamma"] + p["beta"]
    h = jnp.maximum(h, 0.0)
    q_m = h @ p["wm"] + p["bm"]
    q_v = jnp.exp(jnp.clip(h @ p["wv"] + p["bv"], -5.0, 5.0))
    latent = q_m + jnp.sqrt(q_v) * noise
    return q_m, q_v, latent


if __name__ == "__main__":
    B, n_input, n_hidden, n_output = 8, 32, 32, 16

    key = jax.random.PRNGKey(0)
    k_x, k_p, k_n = jax.random.split(key, 3)

    x = jax.random.normal(k_x, (B, n_input), jnp.float32)
    params = init_params(k_p, n_input, n_hidden, n_output)
    noise = jax.random.normal(k_n, (B, n_output), jnp.float32)

    q_m, q_v, latent = encoder_forward(x, params, noise)
    jax.block_until_ready((q_m, q_v, latent))

    # correctness check against a pure-JAX reference (unfused BN / separate heads)
    rm, rv, rl = reference_forward(x, params, noise)
    assert q_m.shape == (B, n_output) and q_v.shape == (B, n_output) and latent.shape == (B, n_output)
    assert jnp.allclose(q_m, rm, atol=1e-4, rtol=1e-4)
    assert jnp.allclose(q_v, rv, atol=1e-4, rtol=1e-4)
    assert jnp.allclose(latent, rl, atol=1e-4, rtol=1e-4)

    print("KERNEL_OK")
</pallas_src>

<mosaic_0001>
module attributes {stable_mosaic.version = 11 : i64} {
  func.func @encoder_kernel(%arg0: i32, %arg1: memref<8x32xf32, #tpu.memory_space<vmem>>, %arg2: memref<32x32xf32, #tpu.memory_space<vmem>>, %arg3: memref<1x32xf32, #tpu.memory_space<vmem>>, %arg4: memref<32x256xf32, #tpu.memory_space<vmem>>, %arg5: memref<1x256xf32, #tpu.memory_space<vmem>>, %arg6: memref<8x128xf32, #tpu.memory_space<vmem>>, %arg7: memref<8x384xf32, #tpu.memory_space<vmem>>) attributes {dimension_semantics = [#tpu.dimension_semantics<parallel>], iteration_bounds = array<i64: 1>, scalar_prefetch = 0 : i64, scratch_operands = 0 : i64, tpu.core_type = #tpu.core_type<tc>, window_params = [{transform_indices = @transform_0, window_bounds = array<i64: 8, 32>}, {pipeline_mode = #tpu.pipeline_mode<synchronous>, transform_indices = @transform_1, window_bounds = array<i64: 32, 32>}, {pipeline_mode = #tpu.pipeline_mode<synchronous>, transform_indices = @transform_2, window_bounds = array<i64: 1, 32>}, {pipeline_mode = #tpu.pipeline_mode<synchronous>, transform_indices = @transform_3, window_bounds = array<i64: 32, 256>}, {pipeline_mode = #tpu.pipeline_mode<synchronous>, transform_indices = @transform_4, window_bounds = array<i64: 1, 256>}, {transform_indices = @transform_5, window_bounds = array<i64: 8, 128>}, {transform_indices = @transform_6, window_bounds = array<i64: 8, 384>}]} {
    %c0 = arith.constant 0 : index
    %c0_0 = arith.constant 0 : index
    %0 = vector.load %arg1[%c0, %c0_0] : memref<8x32xf32, #tpu.memory_space<vmem>>, vector<8x32xf32>
    %c0_1 = arith.constant 0 : index
    %c0_2 = arith.constant 0 : index
    %1 = vector.load %arg2[%c0_1, %c0_2] : memref<32x32xf32, #tpu.memory_space<vmem>>, vector<32x32xf32>
    %cst = arith.constant dense<0.000000e+00> : vector<8x32xf32>
    %2 = tpu.matmul %0, %1, %cst {dimension_numbers = #tpu.dot_dimension_numbers<[1], [0], [0], [1], [0, 0, 1, 1], [], []>} : vector<8x32xf32>, vector<32x32xf32>, vector<8x32xf32> -> vector<8x32xf32>
    %c0_3 = arith.constant 0 : index
    %c0_4 = arith.constant 0 : index
    %3 = vector.load %arg3[%c0_3, %c0_4] : memref<1x32xf32, #tpu.memory_space<vmem>>, vector<1x32xf32>
    %4 = vector.broadcast %3 : vector<1x32xf32> to vector<8x32xf32>
    %5 = arith.addf %2, %4 : vector<8x32xf32>
    %cst_5 = arith.constant 0.000000e+00 : f32
    %6 = vector.broadcast %cst_5 : f32 to vector<8x32xf32>
    %7 = arith.maximumf %5, %6 : vector<8x32xf32>
    %c0_6 = arith.constant 0 : index
    %c0_7 = arith.constant 0 : index
    %8 = vector.load %arg4[%c0_6, %c0_7] : memref<32x256xf32, #tpu.memory_space<vmem>>, vector<32x256xf32>
    %cst_8 = arith.constant dense<0.000000e+00> : vector<8x256xf32>
    %9 = tpu.matmul %7, %8, %cst_8 {dimension_numbers = #tpu.dot_dimension_numbers<[1], [0], [0], [1], [0, 0, 1, 1], [], []>} : vector<8x32xf32>, vector<32x256xf32>, vector<8x256xf32> -> vector<8x256xf32>
    %c0_9 = arith.constant 0 : index
    %c0_10 = arith.constant 0 : index
    %10 = vector.load %arg5[%c0_9, %c0_10] : memref<1x256xf32, #tpu.memory_space<vmem>>, vector<1x256xf32>
    %11 = vector.broadcast %10 : vector<1x256xf32> to vector<8x256xf32>
    %12 = arith.addf %9, %11 : vector<8x256xf32>
    %13 = vector.extract_strided_slice %12 {offsets = [0, 0], sizes = [8, 128], strides = [1, 1]} : vector<8x256xf32> to vector<8x128xf32>
    %14 = vector.extract_strided_slice %12 {offsets = [0, 128], sizes = [8, 128], strides = [1, 1]} : vector<8x256xf32> to vector<8x128xf32>
    %cst_11 = arith.constant -5.000000e+00 : f32
    %cst_12 = arith.constant 5.000000e+00 : f32
    %15 = vector.broadcast %cst_11 : f32 to vector<8x128xf32>
    %16 = arith.maximumf %15, %14 : vector<8x128xf32>
    %17 = vector.broadcast %cst_12 : f32 to vector<8x128xf32>
    %18 = arith.minimumf %17, %16 : vector<8x128xf32>
    %19 = math.exp %18 : vector<8x128xf32>
    %cst_13 = arith.constant 5.000000e-01 : f32
    %20 = vector.broadcast %cst_13 : f32 to vector<8x128xf32>
    %21 = arith.mulf %20, %18 : vector<8x128xf32>
    %22 = math.exp %21 : vector<8x128xf32>
    %c0_14 = arith.constant 0 : index
    %c0_15 = arith.constant 0 : index
    %23 = vector.load %arg6[%c0_14, %c0_15] : memref<8x128xf32, #tpu.memory_space<vmem>>, vector<8x128xf32>
    %24 = arith.mulf %22, %23 : vector<8x128xf32>
    %25 = arith.addf %13, %24 : vector<8x128xf32>
    %26 = tpu.concatenate %13, %19, %25 in 1 : vector<8x128xf32>, vector<8x128xf32>, vector<8x128xf32> -> vector<8x384xf32>
    %c0_16 = arith.constant 0 : index
    %c0_17 = arith.constant 0 : index
    %27 = vector.load %arg7[%c0_16, %c0_17] : memref<8x384xf32, #tpu.memory_space<vmem>>, vector<8x384xf32>
    tpu.vector_store %arg7[%c0_16, %c0_17], %26 {strides = array<i32>} : memref<8x384xf32, #tpu.memory_space<vmem>>, vector<8x384xf32>,
    return
  }
  func.func @transform_0(%arg0: i32) -> (i32, i32) {
    %c0_i32 = arith.constant 0 : i32
    %c0_i32_0 = arith.constant 0 : i32
    return %arg0, %c0_i32 : i32, i32
  }
  func.func @transform_1(%arg0: i32) -> (i32, i32) {
    %c0_i32 = arith.constant 0 : i32
    %c0_i32_0 = arith.constant 0 : i32
    %c0_i32_1 = arith.constant 0 : i32
    return %c0_i32, %c0_i32_0 : i32, i32
  }
  func.func @transform_2(%arg0: i32) -> (i32, i32) {
    %c0_i32 = arith.constant 0 : i32
    %c0_i32_0 = arith.constant 0 : i32
    %c0_i32_1 = arith.constant 0 : i32
    return %c0_i32, %c0_i32_0 : i32, i32
  }
  func.func @transform_3(%arg0: i32) -> (i32, i32) {
    %c0_i32 = arith.constant 0 : i32
    %c0_i32_0 = arith.constant 0 : i32
    %c0_i32_1 = arith.constant 0 : i32
    return %c0_i32, %c0_i32_0 : i32, i32
  }
  func.func @transform_4(%arg0: i32) -> (i32, i32) {
    %c0_i32 = arith.constant 0 : i32
    %c0_i32_0 = arith.constant 0 : i32
    %c0_i32_1 = arith.constant 0 : i32
    return %c0_i32, %c0_i32_0 : i32, i32
  }
  func.func @transform_5(%arg0: i32) -> (i32, i32) {
    %c0_i32 = arith.constant 0 : i32
    %c0_i32_0 = arith.constant 0 : i32
    return %arg0, %c0_i32 : i32, i32
  }
  func.func @transform_6(%arg0: i32) -> (i32, i32) {
    %c0_i32 = arith.constant 0 : i32
    %c0_i32_0 = arith.constant 0 : i32
    return %arg0, %c0_i32 : i32, i32
  }
}

</mosaic_0001>

<bundles_post_ra>
// kernel: tpu_custom_call.1
= control target key start
LH: loop header
LB: loop body
LE: loop exit
PB: predicated region body
PF: predicated region fallthrough
CT: control target
= control target key end

     0   :  { %11 = vsyncpa [#allocation3], 0  ;;  %s498_s0 = inlined_call_operand.hbm [shape: f32[8,32], index: 0, kind: input, shape index: {}]   ;;  %s499_s1 = inlined_call_operand.hbm [shape: f32[32,32], index: 1, kind: input, shape index: {}]   ;;  %s500_s2 = inlined_call_operand.vmem [shape: f32[1,32], index: 2, kind: input, shape index: {}]   ;;  %s501_s3 = inlined_call_operand.hbm [shape: f32[32,256], index: 3, kind: input, shape index: {}]   ;;  %s502_s4 = inlined_call_operand.hbm [shape: f32[1,256], index: 4, kind: input, shape index: {}]   ;;  %s503_s5 = inlined_call_operand.vmem [shape: f32[8,128], index: 5, kind: input, shape index: {}]   ;;  %s504_s6 = inlined_call_operand.hbm [shape: f32[8,384], index: 6, kind: output, shape index: {}]  }
   0x1   :  { %12 = vsyncpa [#allocation6], 0 }
   0x2   :  { %13 = vsyncpa [#allocation9], 0 }
   0x3   :  { %14 = vsyncpa [#allocation4], 0  ;;  %s429_s21 = smov [#allocation5]  }
   0x4   :  { %s30_s22 = sshll.u32 %s429_s21, 4  ;;  %s31_s22 = int_to_ptr.vmem [resolvable:$true] %s30_s22 }
   0x5   :  { %s329_s23 = scalar_lea.vmem %s31_s22, 512  ;;  %p334_p1 = scmp.lt.s32.totalorder %s31_s22, %s31_s22 }
   0x6   :  { %p330_p0 = scmp.ne.s32.totalorder %s31_s22, %s329_s23  ;;  %p335_p2 = scmp.lt.s32.totalorder %s329_s23, %s329_s23 }
   0x8   :  { %p336_p3 = por %p335_p2, %p334_p1 }
   0xa   :  { %p337_p4 = pnand %p336_p3, %p330_p0 }
   0xc   :  { %340 = shalt.err (!%p337_p4)
}
   0xd   :  { %s430_s24 = smov 128   ;;  %s431_s25 = smov 8  }
   0xe   :  { %36 = dma.hbm_to_vmem [thread:$0]  %s499_s1, 512, %s31_s22, [#allocation6], %s430_s24, %s430_s24, %s431_s25  }
   0xf   :  { %s432_s28 = smov [#allocation2]   ;;  %s433_s30 = smov [#allocation7]  }
  0x10   :  { %s21_s29 = sshll.u32 %s432_s28, 4  ;;  %s44_s7 = sshll.u32 %s433_s30, 4  ;;  %s22_s29 = int_to_ptr.vmem [resolvable:$true] %s21_s29  ;;  %s45_s7 = int_to_ptr.vmem [resolvable:$true] %s44_s7 }
  0x11   :  { %s349_s8 = scalar_lea.vmem %s22_s29, 128  ;;  %p354_p6 = scmp.lt.s32.totalorder %s22_s29, %s22_s29 }
  0x12   :  { %p350_p5 = scmp.ne.s32.totalorder %s22_s29, %s349_s8  ;;  %p355_p7 = scmp.lt.s32.totalorder %s349_s8, %s349_s8 }
  0x14   :  { %p356_p8 = por %p355_p7, %p354_p6 }
  0x16   :  { %p357_p9 = pnand %p356_p8, %p350_p5 }
  0x18   :  { %360 = shalt.err (!%p357_p9)
}
  0x19   :  { %24 = dma.hbm_to_vmem [thread:$0]  %s498_s0, 128, %s22_s29, [#allocation3]  }
  0x1a   :  { %s369_s11 = scalar_lea.vmem %s45_s7, 1024  ;;  %p374_p11 = scmp.lt.s32.totalorder %s45_s7, %s45_s7 }
  0x1b   :  { %p370_p10 = scmp.ne.s32.totalorder %s45_s7, %s369_s11  ;;  %p375_p12 = scmp.lt.s32.totalorder %s369_s11, %s369_s11 }
  0x1d   :  { %p376_p13 = por %p375_p12, %p374_p11 }
  0x1f   :  { %p377_p0 = pnand %p376_p13, %p370_p10 }
  0x21   :  { %380 = shalt.err (!%p377_p0)
}
  0x22   :  { %s434_s1 = smov 256   ;;  %s435_s12 = smov 16  }
  0x23   :  { %50 = dma.hbm_to_vmem [thread:$0]  %s501_s3, 1024, %s45_s7, [#allocation6], %s434_s1, %s434_s1, %s435_s12  }
  0x24   :  { %s436_s15 = smov [#allocation8]  }
  0x25   :  { %s57_s16 = sshll.u32 %s436_s15, 4  ;;  %s58_s16 = int_to_ptr.vmem [resolvable:$true] %s57_s16 }
  0x26   :  { %s389_s17 = scalar_lea.vmem %s58_s16, 32  ;;  %p394_p2 = scmp.lt.s32.totalorder %s58_s16, %s58_s16 }
  0x27   :  { %p390_p1 = scmp.ne.s32.totalorder %s58_s16, %s389_s17  ;;  %p395_p3 = scmp.lt.s32.totalorder %s389_s17, %s389_s17 }
  0x29   :  { %p396_p4 = por %p395_p3, %p394_p2 }
  0x2b   :  { %p397_p5 = pnand %p396_p4, %p390_p1 }
  0x2d   :  { %400 = shalt.err (!%p397_p5)
}
  0x2e   :  { %60 = dma.hbm_to_vmem [thread:$0]  %s502_s4, 32, %s58_s16, [#allocation9]  }
  0x2f   :  { %421 = dma.done.wait [#allocation3], 128  }
  0x30   :  { %422 = vsyncadd [#allocation3], 4294967168 }
  0x31   :  { %423 = dma.done.wait [#allocation6], 1536  }
  0x32   :  { %424 = vsyncadd [#allocation6], 4294965760 }
  0x33   :  { %425 = dma.done.wait [#allocation9], 32  }
  0x34   :  { %426 = vsyncadd [#allocation9], 4294967264  ;;  %v437_v0 = vmov 0.0   ;;  %vm438_vm0 = vmmov 0   ;;  %v79_v1 = vld [vmem:[#allocation5 + $0x18] sm:$0xff]  ;;  %v78_v2 = vld [vmem:[#allocation5 + $0x10] sm:$0xff]  ;;  %v172_v19 = vlaneseq }
  0x35   :  { %295 = vmatprep.subr.mxu0 %v437_v0  ;;  %303 = vmatprep.mubr.msk.f32.mxu0 %vm438_vm0, %v437_v0  ;;  %v169_v3 = vld [vmem:[#allocation7 + $0x38] sm:$0xff]  ;;  %v77_v4 = vld [vmem:[#allocation5 + $0x8] sm:$0xff]  ;;  %v168_v5 = vld [vmem:[#allocation7 + $0x30] sm:$0xff]  ;;  %vm87_vm1 = vcmask 261120   ;;  %s439_s20 = smov [#allocation10]  }
  0x36   :  { %249 = vmatprep.mubr.f32.mxu1 %v437_v0  ;;  %296 = vmatpush3.msra.mxu0 %v79_v1  ;;  %v167_v6 = vld [vmem:[#allocation7 + $0x28] sm:$0xff]  ;;  %v76_v7 = vld [vmem:[#allocation5] sm:$0xff]  ;;  %v75_v8 = vld [vmem:[#allocation2] sm:$0xff]  ;;  %v173_v20 = vshrl.u32 %v172_v19, 7  ;;  %s275_s21 = sshll.u32 %s439_s20, 4  ;;  %s276_s21 = int_to_ptr.vmem [resolvable:$true] %s275_s21 }
  0x37   :  { %297 = vmatprep.subr.mxu0 %v437_v0  ;;  %209 = vmatprep.subr.mxu1 %v169_v3  ;;  %v166_v9 = vld [vmem:[#allocation7 + $0x20] sm:$0xff]  ;;  %v165_v10 = vld [vmem:[#allocation7 + $0x18] sm:$0xff]  ;;  %v164_v11 = vld [vmem:[#allocation7 + $0x10] sm:$0xff]  ;;  %s401_s22 = scalar_lea.vmem %s276_s21, 384  ;;  %p406_p7 = scmp.lt.s32.totalorder %s276_s21, %s276_s21 }
  0x38   :  { %298 = vmatpush3.msra.mxu0 %v78_v2  ;;  %210 = vmatpush1.msra.mxu1 %v168_v5  ;;  %v163_v12 = vld [vmem:[#allocation7 + $0x8] sm:$0xff]  ;;  %v162_v13 = vld [vmem:[#allocation7] sm:$0xff]  ;;  %v286_v14 = vld [vmem:[%s500_s2] ss:$0 sm:$0xff]  ;;  %v174_v21 = vsub.s32 0, %v173_v20  ;;  %v178_v23 = vsub.s32 1, %v173_v20  ;;  %p402_p6 = scmp.ne.s32.totalorder %s276_s21, %s401_s22  ;;  %p407_p8 = scmp.lt.s32.totalorder %s401_s22, %s401_s22 }
  0x39   :  { %299 = vmatprep.subr.mxu0 %v437_v0  ;;  %211 = vmatprep.subr.mxu1 %v167_v6  ;;  %v170_v22 = vld [vmem:[#allocation8] sm:$0x3]  ;;  %v263_v35 = vld [vmem:[%s503_s5] sm:$0xff] }
  0x3a   :  { %300 = vmatpush3.msra.mxu0 %v77_v4  ;;  %212 = vmatpush1.msra.mxu1 %v166_v9  ;;  %v175_v24 = vrot.slane %v170_v22, %v174_v21  ;;  %v179_v25 = vrot.slane %v170_v22, %v178_v23  ;;  %p408_p9 = por %p407_p8, %p406_p7 }
  0x3b   :  { %301 = vmatprep.subr.mxu0 %v437_v0  ;;  %213 = vmatprep.subr.mxu1 %v165_v10 }
  0x3c   :  { %302 = vmatpush3.msra.mxu0 %v76_v7  ;;  %214 = vmatpush1.msra.mxu1 %v164_v11  ;;  %p409_p10 = pnand %p408_p9, %p402_p6 }
  0x3d   :  { %304 = vmatmul.mubr.msk.f32.vlgmr.msra.gmra.mxu0 %vm87_vm1, %v75_v8  ;;  %215 = vmatprep.subr.mxu1 %v163_v12 }
  0x3e   :  { %216 = vmatpush1.msra.mxu1 %v162_v13 }
  0xfd   :  { %v157_v15 = vpop.f32.mrf.mxu0 }
  0xfe   :  { %v158_v16 = vadd.f32 %v286_v14, %v157_v15 }
  0xff   :  { %v305_v17 = vpop.f32.mrf.mxu0 }
 0x100   :  { %v161_v18 = vmax.f32 %v158_v16, 0.0 }
 0x102   :  { %288 = vmatmul.mubr.msk.f32.vlgmr.msra.gmra.mxu1 %vm87_vm1, %v161_v18 }
 0x1c2   :  { %v251_v26 = vpop.f32.mrf.mxu1 }
 0x1c3   :  { %v252_v27 = vadd.f32 %v251_v26, %v175_v24 }
 0x1c4   :  { %v253_v28 = vpop.f32.mrf.mxu1 }
 0x1c5   :  { %266 = vst [vmem:[#allocation10] sm:$0xff] %v252_v27  ;;  %v254_v29 = vadd.f32 %v253_v28, %v179_v25 }
 0x1c7   :  { %v289_v30 = vclamps-f32 %v254_v29, 5.0 }
 0x1c9   :  { %v258_v31 = vmul.f32 1.442695, %v289_v30  ;;  %v260_v32 = vmul.f32 0.5, %v289_v30 }
 0x1cb   :  { %317 = vpow2.f32 %v258_v31  ;;  %v261_v33 = vmul.f32 1.442695, %v260_v32 }
 0x1cd   :  { %319 = vpow2.f32 %v261_v33 }
 0x1d8   :  { %v318_v34 = vpop.eup %317 }
 0x1d9   :  { %267 = vst [vmem:[#allocation10 + $0x8] sm:$0xff] %v318_v34 }
 0x1da   :  { %v320_v36 = vpop.eup %319 }
 0x1db   :  { %v264_v37 = vmul.f32 %v320_v36, %v263_v35 }
 0x1dd   :  { %v265_v38 = vadd.f32 %v264_v37, %v252_v27 }
 0x1df   :  { %268 = vst [vmem:[#allocation10 + $0x10] sm:$0xff] %v265_v38 }
 0x1e0   :  { %412 = shalt.err (!%p409_p10)
}
 0x1e1   :  { %278 = dma.vmem_to_hbm [thread:$0]  %s276_s21, 384, %s504_s6, [#allocation4]  }
 0x1e2   :  { %427 = dma.done.wait [#allocation4], 384  }
 0x1e3   :  { %428 = vsyncadd [#allocation4], 4294966912 }
 0x1e4   :  { %282 = vsyncpa [#allocation3], 1 }
 0x1e5   :  { %283 = vsyncpa [#allocation6], 1 }
 0x1e6   :  { %284 = vsyncpa [#allocation9], 1 }
 0x1e7   :  { %285 = vsyncpa [#allocation4], 1 }

</bundles_post_ra>
